<compile_context>
chip_gen: v5e
topology: v5e:2x2
jax: 0.10.0
libtpu: 0.0.40
codegen_flags: <defaults>
</compile_context>

<pallas_src>
import functools

import jax
import jax.numpy as jnp
from jax import lax
from jax.experimental import pallas as pl
from jax.experimental.pallas import tpu as pltpu


# ------------------------------ fused kernel --------------------------------


def _fused_attention_kernel(x_ref, w_in_ref, b_in_ref, w_tail_ref, b_tail_ref,
                            o_ref, *, num_heads, scale):
    # One batch element per grid step; everything stays resident in VMEM.
    x = x_ref[0]                                                     # (N, C)

    # Folded (qkv Linear ∘ MHA in_proj): one GEMM, weights pre-transposed.
    qkv = jnp.dot(x, w_in_ref[...],
                  preferred_element_type=jnp.float32) + b_in_ref[...]  # (N, 3C)

    n, c3 = qkv.shape
    c = c3 // 3
    d = c // num_heads
    q = qkv[:, :c]
    k = qkv[:, c:2 * c]
    v = qkv[:, 2 * c:]

    # Per-head attention (static unroll over the small head count).
    outs = []
    for h in range(num_heads):
        qh = q[:, h * d:(h + 1) * d]                                 # (N, D)
        kh = k[:, h * d:(h + 1) * d]
        vh = v[:, h * d:(h + 1) * d]
        # Contract last dims of both operands (no in-kernel transpose).
        s = lax.dot_general(qh, kh, (((1,), (1,)), ((), ())),
                            preferred_element_type=jnp.float32) * scale  # (N, N)
        s = s - jnp.max(s, axis=-1, keepdims=True)
        p = jnp.exp(s)                                               # f32 (v5e-safe)
        inv_l = pl.reciprocal(jnp.sum(p, axis=-1, keepdims=True), approx=True)
        outs.append(jnp.dot(p * inv_l, vh,
                            preferred_element_type=jnp.float32))     # (N, D)
    o = jnp.concatenate(outs, axis=-1)                               # (N, C)

    # Folded (MHA out_proj ∘ final proj): one GEMM.
    y = jnp.dot(o, w_tail_ref[...],
                preferred_element_type=jnp.float32) + b_tail_ref[...]
    o_ref[0] = y.astype(o_ref.dtype)


def attention_forward(x, params, num_heads):
    """x: (B, N, C) -> (B, N, C).  attn_mask=None path only."""
    B, N, C = x.shape
    D = C // num_heads

    # ---- fold weight chains once, outside the kernel (pure jnp / XLA) ----
    wq, wk, wv = jnp.split(params["in_proj_w"], 3, axis=0)           # each (C, C)
    wqkv_q, wqkv_k, wqkv_v = jnp.split(params["w_qkv"], 3, axis=0)   # each (C, C)
    # q = x @ (wq @ wqkv_q).T + bq  ->  pre-transpose so kernel does x @ W
    w_in = jnp.concatenate(
        [(wq @ wqkv_q).T, (wk @ wqkv_k).T, (wv @ wqkv_v).T], axis=1)  # (C, 3C)
    b_in = params["in_proj_b"].reshape(1, 3 * C)

    # y = (o @ Wout.T + bout) @ Wproj.T + bproj
    #   = o @ (Wproj @ Wout).T + (Wproj @ bout + bproj)
    w_tail = (params["proj_w"] @ params["out_proj_w"]).T             # (C, C), pre-T
    b_tail = (params["proj_w"] @ params["out_proj_b"]
              + params["proj_b"]).reshape(1, C)

    kernel = functools.partial(_fused_attention_kernel,
                               num_heads=num_heads, scale=float(D) ** -0.5)
    return pl.pallas_call(
        kernel,
        out_shape=jax.ShapeDtypeStruct((B, N, C), x.dtype),
        grid=(B,),
        in_specs=[
            pl.BlockSpec((1, N, C), lambda b: (b, 0, 0)),      # x, one batch per step
            pl.BlockSpec((C, 3 * C), lambda b: (0, 0)),        # fused in-proj weight
            pl.BlockSpec((1, 3 * C), lambda b: (0, 0)),        # fused in-proj bias
            pl.BlockSpec((C, C), lambda b: (0, 0)),            # fused tail weight
            pl.BlockSpec((1, C), lambda b: (0, 0)),            # fused tail bias
        ],
        out_specs=pl.BlockSpec((1, N, C), lambda b: (b, 0, 0)),
        compiler_params=pltpu.CompilerParams(
            dimension_semantics=("parallel",)),                # shards over TCs on v7x
    )(x, w_in, b_in, w_tail, b_tail)


# ------------------------------ params / reference --------------------------


def init_attention_params(key, dim):
    ks = jax.random.split(key, 7)
    s = 0.125
    f = jnp.float32
    return {
        "w_qkv": jax.random.normal(ks[0], (3 * dim, dim), f) * s,      # qkv Linear, no bias
        "in_proj_w": jax.random.normal(ks[1], (3 * dim, dim), f) * s,  # MHA in_proj
        "in_proj_b": jax.random.normal(ks[2], (3 * dim,), f) * s,
        "out_proj_w": jax.random.normal(ks[3], (dim, dim), f) * s,     # MHA out_proj
        "out_proj_b": jax.random.normal(ks[4], (dim,), f) * s,
        "proj_w": jax.random.normal(ks[5], (dim, dim), f) * s,         # final proj
        "proj_b": jax.random.normal(ks[6], (dim,), f) * s,
    }


def attention_reference(x, p, num_heads):
    """Unfused pure-jnp reference matching the PyTorch forward (eval mode)."""
    B, N, C = x.shape
    H, D = num_heads, C // num_heads
    qkv = x.reshape(B * N, C) @ p["w_qkv"].T
    q0, k0, v0 = jnp.split(qkv, 3, axis=-1)
    wq, wk, wv = jnp.split(p["in_proj_w"], 3, axis=0)
    bq, bk, bv = jnp.split(p["in_proj_b"], 3, axis=0)
    q = q0 @ wq.T + bq
    k = k0 @ wk.T + bk
    v = v0 @ wv.T + bv
    qh = q.reshape(B, N, H, D).transpose(0, 2, 1, 3)
    kh = k.reshape(B, N, H, D).transpose(0, 2, 1, 3)
    vh = v.reshape(B, N, H, D).transpose(0, 2, 1, 3)
    s = jnp.einsum("bhnd,bhmd->bhnm", qh, kh) * (float(D) ** -0.5)
    a = jax.nn.softmax(s, axis=-1)
    o = jnp.einsum("bhnm,bhmd->bhnd", a, vh)
    o = o.transpose(0, 2, 1, 3).reshape(B * N, C)
    o = o @ p["out_proj_w"].T + p["out_proj_b"]
    y = o @ p["proj_w"].T + p["proj_b"]
    return y.reshape(B, N, C)


# ----------------------------------- main -----------------------------------


if __name__ == "__main__":
    B, N, C = 2, 8, 32
    num_heads = 4  # head_dim = 8

    key = jax.random.PRNGKey(0)
    kx, kp = jax.random.split(key)
    x = jax.random.normal(kx, (B, N, C), jnp.float32)
    params = init_attention_params(kp, C)

    out = attention_forward(x, params, num_heads)
    out = jax.block_until_ready(out)

    ref = attention_reference(x, params, num_heads)
    assert out.shape == (B, N, C)
    # tolerance covers weight-chain folding reassociation + approx reciprocal
    assert jnp.allclose(out, ref, atol=2e-3, rtol=2e-3), \
        float(jnp.max(jnp.abs(out - ref)))

    print("KERNEL_OK")
</pallas_src>

<mosaic_0001>
module attributes {stable_mosaic.version = 11 : i64} {
  func.func @_fused_attention_kernel(%arg0: i32, %arg1: memref<1x8x32xf32, #tpu.memory_space<vmem>>, %arg2: memref<32x96xf32, #tpu.memory_space<vmem>>, %arg3: memref<1x96xf32, #tpu.memory_space<vmem>>, %arg4: memref<32x32xf32, #tpu.memory_space<vmem>>, %arg5: memref<1x32xf32, #tpu.memory_space<vmem>>, %arg6: memref<1x8x32xf32, #tpu.memory_space<vmem>>) attributes {dimension_semantics = [#tpu.dimension_semantics<parallel>], iteration_bounds = array<i64: 2>, scalar_prefetch = 0 : i64, scratch_operands = 0 : i64, tpu.core_type = #tpu.core_type<tc>, window_params = [{transform_indices = @transform_0, window_bounds = array<i64: 1, 8, 32>}, {pipeline_mode = #tpu.pipeline_mode<synchronous>, transform_indices = @transform_1, window_bounds = array<i64: 32, 96>}, {pipeline_mode = #tpu.pipeline_mode<synchronous>, transform_indices = @transform_2, window_bounds = array<i64: 1, 96>}, {pipeline_mode = #tpu.pipeline_mode<synchronous>, transform_indices = @transform_3, window_bounds = array<i64: 32, 32>}, {pipeline_mode = #tpu.pipeline_mode<synchronous>, transform_indices = @transform_4, window_bounds = array<i64: 1, 32>}, {transform_indices = @transform_5, window_bounds = array<i64: 1, 8, 32>}]} {
    %c0 = arith.constant 0 : index
    %c0_0 = arith.constant 0 : index
    %c0_1 = arith.constant 0 : index
    %0 = vector.load %arg1[%c0, %c0_0, %c0_1] : memref<1x8x32xf32, #tpu.memory_space<vmem>>, vector<1x8x32xf32>
    %1 = vector.shape_cast %0 : vector<1x8x32xf32> to vector<8x32xf32>
    %c0_2 = arith.constant 0 : index
    %c0_3 = arith.constant 0 : index
    %2 = vector.load %arg2[%c0_2, %c0_3] : memref<32x96xf32, #tpu.memory_space<vmem>>, vector<32x96xf32>
    %cst = arith.constant dense<0.000000e+00> : vector<8x96xf32>
    %3 = tpu.matmul %1, %2, %cst {dimension_numbers = #tpu.dot_dimension_numbers<[1], [0], [0], [1], [0, 0, 1, 1], [], []>} : vector<8x32xf32>, vector<32x96xf32>, vector<8x96xf32> -> vector<8x96xf32>
    %c0_4 = arith.constant 0 : index
    %c0_5 = arith.constant 0 : index
    %4 = vector.load %arg3[%c0_4, %c0_5] : memref<1x96xf32, #tpu.memory_space<vmem>>, vector<1x96xf32>
    %5 = vector.broadcast %4 : vector<1x96xf32> to vector<8x96xf32>
    %6 = arith.addf %3, %5 : vector<8x96xf32>
    %7 = vector.extract_strided_slice %6 {offsets = [0, 0], sizes = [8, 32], strides = [1, 1]} : vector<8x96xf32> to vector<8x32xf32>
    %8 = vector.extract_strided_slice %6 {offsets = [0, 32], sizes = [8, 32], strides = [1, 1]} : vector<8x96xf32> to vector<8x32xf32>
    %9 = vector.extract_strided_slice %6 {offsets = [0, 64], sizes = [8, 32], strides = [1, 1]} : vector<8x96xf32> to vector<8x32xf32>
    %10 = vector.extract_strided_slice %7 {offsets = [0, 0], sizes = [8, 8], strides = [1, 1]} : vector<8x32xf32> to vector<8x8xf32>
    %11 = vector.extract_strided_slice %8 {offsets = [0, 0], sizes = [8, 8], strides = [1, 1]} : vector<8x32xf32> to vector<8x8xf32>
    %12 = vector.extract_strided_slice %9 {offsets = [0, 0], sizes = [8, 8], strides = [1, 1]} : vector<8x32xf32> to vector<8x8xf32>
    %cst_6 = arith.constant dense<0.000000e+00> : vector<8x8xf32>
    %13 = tpu.matmul %10, %11, %cst_6 {dimension_numbers = #tpu.dot_dimension_numbers<[1], [1], [0], [0], [0, 0, 1, 0], [], []>} : vector<8x8xf32>, vector<8x8xf32>, vector<8x8xf32> -> vector<8x8xf32>
    %cst_7 = arith.constant 0.353553385 : f32
    %14 = vector.broadcast %cst_7 : f32 to vector<8x8xf32>
    %15 = arith.mulf %13, %14 : vector<8x8xf32>
    %cst_8 = arith.constant dense<0xFF800000> : vector<8xf32>
    %16 = vector.multi_reduction <maximumf>, %15, %cst_8 [1] : vector<8x8xf32> to vector<8xf32>
    %17 = vector.shape_cast %16 : vector<8xf32> to vector<8x1xf32>
    %18 = vector.broadcast %17 : vector<8x1xf32> to vector<8x8xf32>
    %19 = arith.subf %15, %18 : vector<8x8xf32>
    %20 = math.exp %19 : vector<8x8xf32>
    %cst_9 = arith.constant dense<0.000000e+00> : vector<8xf32>
    %21 = vector.multi_reduction <add>, %20, %cst_9 [1] : vector<8x8xf32> to vector<8xf32>
    %22 = vector.shape_cast %21 : vector<8xf32> to vector<8x1xf32>
    %23 = tpu.reciprocal %22 {approx = true} : vector<8x1xf32> -> vector<8x1xf32>
    %24 = vector.broadcast %23 : vector<8x1xf32> to vector<8x8xf32>
    %25 = arith.mulf %20, %24 : vector<8x8xf32>
    %cst_10 = arith.constant dense<0.000000e+00> : vector<8x8xf32>
    %26 = tpu.matmul %25, %12, %cst_10 {dimension_numbers = #tpu.dot_dimension_numbers<[1], [0], [0], [1], [0, 0, 1, 1], [], []>} : vector<8x8xf32>, vector<8x8xf32>, vector<8x8xf32> -> vector<8x8xf32>
    %27 = vector.extract_strided_slice %7 {offsets = [0, 8], sizes = [8, 8], strides = [1, 1]} : vector<8x32xf32> to vector<8x8xf32>
    %28 = vector.extract_strided_slice %8 {offsets = [0, 8], sizes = [8, 8], strides = [1, 1]} : vector<8x32xf32> to vector<8x8xf32>
    %29 = vector.extract_strided_slice %9 {offsets = [0, 8], sizes = [8, 8], strides = [1, 1]} : vector<8x32xf32> to vector<8x8xf32>
    %cst_11 = arith.constant dense<0.000000e+00> : vector<8x8xf32>
    %30 = tpu.matmul %27, %28, %cst_11 {dimension_numbers = #tpu.dot_dimension_numbers<[1], [1], [0], [0], [0, 0, 1, 0], [], []>} : vector<8x8xf32>, vector<8x8xf32>, vector<8x8xf32> -> vector<8x8xf32>
    %cst_12 = arith.constant 0.353553385 : f32
    %31 = vector.broadcast %cst_12 : f32 to vector<8x8xf32>
    %32 = arith.mulf %30, %31 : vector<8x8xf32>
    %cst_13 = arith.constant dense<0xFF800000> : vector<8xf32>
    %33 = vector.multi_reduction <maximumf>, %32, %cst_13 [1] : vector<8x8xf32> to vector<8xf32>
    %34 = vector.shape_cast %33 : vector<8xf32> to vector<8x1xf32>
    %35 = vector.broadcast %34 : vector<8x1xf32> to vector<8x8xf32>
    %36 = arith.subf %32, %35 : vector<8x8xf32>
    %37 = math.exp %36 : vector<8x8xf32>
    %cst_14 = arith.constant dense<0.000000e+00> : vector<8xf32>
    %38 = vector.multi_reduction <add>, %37, %cst_14 [1] : vector<8x8xf32> to vector<8xf32>
    %39 = vector.shape_cast %38 : vector<8xf32> to vector<8x1xf32>
    %40 = tpu.reciprocal %39 {approx = true} : vector<8x1xf32> -> vector<8x1xf32>
    %41 = vector.broadcast %40 : vector<8x1xf32> to vector<8x8xf32>
    %42 = arith.mulf %37, %41 : vector<8x8xf32>
    %cst_15 = arith.constant dense<0.000000e+00> : vector<8x8xf32>
    %43 = tpu.matmul %42, %29, %cst_15 {dimension_numbers = #tpu.dot_dimension_numbers<[1], [0], [0], [1], [0, 0, 1, 1], [], []>} : vector<8x8xf32>, vector<8x8xf32>, vector<8x8xf32> -> vector<8x8xf32>
    %44 = vector.extract_strided_slice %7 {offsets = [0, 16], sizes = [8, 8], strides = [1, 1]} : vector<8x32xf32> to vector<8x8xf32>
    %45 = vector.extract_strided_slice %8 {offsets = [0, 16], sizes = [8, 8], strides = [1, 1]} : vector<8x32xf32> to vector<8x8xf32>
    %46 = vector.extract_strided_slice %9 {offsets = [0, 16], sizes = [8, 8], strides = [1, 1]} : vector<8x32xf32> to vector<8x8xf32>
    %cst_16 = arith.constant dense<0.000000e+00> : vector<8x8xf32>
    %47 = tpu.matmul %44, %45, %cst_16 {dimension_numbers = #tpu.dot_dimension_numbers<[1], [1], [0], [0], [0, 0, 1, 0], [], []>} : vector<8x8xf32>, vector<8x8xf32>, vector<8x8xf32> -> vector<8x8xf32>
    %cst_17 = arith.constant 0.353553385 : f32
    %48 = vector.broadcast %cst_17 : f32 to vector<8x8xf32>
    %49 = arith.mulf %47, %48 : vector<8x8xf32>
    %cst_18 = arith.constant dense<0xFF800000> : vector<8xf32>
    %50 = vector.multi_reduction <maximumf>, %49, %cst_18 [1] : vector<8x8xf32> to vector<8xf32>
    %51 = vector.shape_cast %50 : vector<8xf32> to vector<8x1xf32>
    %52 = vector.broadcast %51 : vector<8x1xf32> to vector<8x8xf32>
    %53 = arith.subf %49, %52 : vector<8x8xf32>
    %54 = math.exp %53 : vector<8x8xf32>
    %cst_19 = arith.constant dense<0.000000e+00> : vector<8xf32>
    %55 = vector.multi_reduction <add>, %54, %cst_19 [1] : vector<8x8xf32> to vector<8xf32>
    %56 = vector.shape_cast %55 : vector<8xf32> to vector<8x1xf32>
    %57 = tpu.reciprocal %56 {approx = true} : vector<8x1xf32> -> vector<8x1xf32>
    %58 = vector.broadcast %57 : vector<8x1xf32> to vector<8x8xf32>
    %59 = arith.mulf %54, %58 : vector<8x8xf32>
    %cst_20 = arith.constant dense<0.000000e+00> : vector<8x8xf32>
    %60 = tpu.matmul %59, %46, %cst_20 {dimension_numbers = #tpu.dot_dimension_numbers<[1], [0], [0], [1], [0, 0, 1, 1], [], []>} : vector<8x8xf32>, vector<8x8xf32>, vector<8x8xf32> -> vector<8x8xf32>
    %61 = vector.extract_strided_slice %7 {offsets = [0, 24], sizes = [8, 8], strides = [1, 1]} : vector<8x32xf32> to vector<8x8xf32>
    %62 = vector.extract_strided_slice %8 {offsets = [0, 24], sizes = [8, 8], strides = [1, 1]} : vector<8x32xf32> to vector<8x8xf32>
    %63 = vector.extract_strided_slice %9 {offsets = [0, 24], sizes = [8, 8], strides = [1, 1]} : vector<8x32xf32> to vector<8x8xf32>
    %cst_21 = arith.constant dense<0.000000e+00> : vector<8x8xf32>
    %64 = tpu.matmul %61, %62, %cst_21 {dimension_numbers = #tpu.dot_dimension_numbers<[1], [1], [0], [0], [0, 0, 1, 0], [], []>} : vector<8x8xf32>, vector<8x8xf32>, vector<8x8xf32> -> vector<8x8xf32>
    %cst_22 = arith.constant 0.353553385 : f32
    %65 = vector.broadcast %cst_22 : f32 to vector<8x8xf32>
    %66 = arith.mulf %64, %65 : vector<8x8xf32>
    %cst_23 = arith.constant dense<0xFF800000> : vector<8xf32>
    %67 = vector.multi_reduction <maximumf>, %66, %cst_23 [1] : vector<8x8xf32> to vector<8xf32>
    %68 = vector.shape_cast %67 : vector<8xf32> to vector<8x1xf32>
    %69 = vector.broadcast %68 : vector<8x1xf32> to vector<8x8xf32>
    %70 = arith.subf %66, %69 : vector<8x8xf32>
    %71 = math.exp %70 : vector<8x8xf32>
    %cst_24 = arith.constant dense<0.000000e+00> : vector<8xf32>
    %72 = vector.multi_reduction <add>, %71, %cst_24 [1] : vector<8x8xf32> to vector<8xf32>
    %73 = vector.shape_cast %72 : vector<8xf32> to vector<8x1xf32>
    %74 = tpu.reciprocal %73 {approx = true} : vector<8x1xf32> -> vector<8x1xf32>
    %75 = vector.broadcast %74 : vector<8x1xf32> to vector<8x8xf32>
    %76 = arith.mulf %71, %75 : vector<8x8xf32>
    %cst_25 = arith.constant dense<0.000000e+00> : vector<8x8xf32>
    %77 = tpu.matmul %76, %63, %cst_25 {dimension_numbers = #tpu.dot_dimension_numbers<[1], [0], [0], [1], [0, 0, 1, 1], [], []>} : vector<8x8xf32>, vector<8x8xf32>, vector<8x8xf32> -> vector<8x8xf32>
    %78 = tpu.concatenate %26, %43, %60, %77 in 1 : vector<8x8xf32>, vector<8x8xf32>, vector<8x8xf32>, vector<8x8xf32> -> vector<8x32xf32>
    %c0_26 = arith.constant 0 : index
    %c0_27 = arith.constant 0 : index
    %79 = vector.load %arg4[%c0_26, %c0_27] : memref<32x32xf32, #tpu.memory_space<vmem>>, vector<32x32xf32>
    %cst_28 = arith.constant dense<0.000000e+00> : vector<8x32xf32>
    %80 = tpu.matmul %78, %79, %cst_28 {dimension_numbers = #tpu.dot_dimension_numbers<[1], [0], [0], [1], [0, 0, 1, 1], [], []>} : vector<8x32xf32>, vector<32x32xf32>, vector<8x32xf32> -> vector<8x32xf32>
    %c0_29 = arith.constant 0 : index
    %c0_30 = arith.constant 0 : index
    %81 = vector.load %arg5[%c0_29, %c0_30] : memref<1x32xf32, #tpu.memory_space<vmem>>, vector<1x32xf32>
    %82 = vector.broadcast %81 : vector<1x32xf32> to vector<8x32xf32>
    %83 = arith.addf %80, %82 : vector<8x32xf32>
    %c0_31 = arith.constant 0 : index
    %c0_32 = arith.constant 0 : index
    %c0_33 = arith.constant 0 : index
    %84 = vector.load %arg6[%c0_31, %c0_32, %c0_33] : memref<1x8x32xf32, #tpu.memory_space<vmem>>, vector<1x8x32xf32>
    %85 = vector.shape_cast %84 : vector<1x8x32xf32> to vector<8x32xf32>
    %86 = vector.shape_cast %83 : vector<8x32xf32> to vector<1x8x32xf32>
    tpu.vector_store %arg6[%c0_31, %c0_32, %c0_33], %86 {strides = array<i32>} : memref<1x8x32xf32, #tpu.memory_space<vmem>>, vector<1x8x32xf32>,
    return
  }
  func.func @transform_0(%arg0: i32) -> (i32, i32, i32) {
    %c0_i32 = arith.constant 0 : i32
    %c0_i32_0 = arith.constant 0 : i32
    %c0_i32_1 = arith.constant 0 : i32
    return %arg0, %c0_i32, %c0_i32_0 : i32, i32, i32
  }
  func.func @transform_1(%arg0: i32) -> (i32, i32) {
    %c0_i32 = arith.constant 0 : i32
    %c0_i32_0 = arith.constant 0 : i32
    %c0_i32_1 = arith.constant 0 : i32
    return %c0_i32, %c0_i32_0 : i32, i32
  }
  func.func @transform_2(%arg0: i32) -> (i32, i32) {
    %c0_i32 = arith.constant 0 : i32
    %c0_i32_0 = arith.constant 0 : i32
    %c0_i32_1 = arith.constant 0 : i32
    return %c0_i32, %c0_i32_0 : i32, i32
  }
  func.func @transform_3(%arg0: i32) -> (i32, i32) {
    %c0_i32 = arith.constant 0 : i32
    %c0_i32_0 = arith.constant 0 : i32
    %c0_i32_1 = arith.constant 0 : i32
    return %c0_i32, %c0_i32_0 : i32, i32
  }
  func.func @transform_4(%arg0: i32) -> (i32, i32) {
    %c0_i32 = arith.constant 0 : i32
    %c0_i32_0 = arith.constant 0 : i32
    %c0_i32_1 = arith.constant 0 : i32
    return %c0_i32, %c0_i32_0 : i32, i32
  }
  func.func @transform_5(%arg0: i32) -> (i32, i32, i32) {
    %c0_i32 = arith.constant 0 : i32
    %c0_i32_0 = arith.constant 0 : i32
    %c0_i32_1 = arith.constant 0 : i32
    return %arg0, %c0_i32, %c0_i32_0 : i32, i32, i32
  }
}

</mosaic_0001>

<bundles_post_ra>
// kernel: tpu_custom_call.1
= control target key start
LH: loop header
LB: loop body
LE: loop exit
PB: predicated region body
PF: predicated region fallthrough
CT: control target
= control target key end

     0   :  { %10 = vsyncpa [#allocation3], 0  ;;  %s1260_s0 = inlined_call_operand.hbm [shape: f32[2,8,32], index: 0, kind: input, shape index: {}]   ;;  %s1261_s1 = inlined_call_operand.hbm [shape: f32[32,96], index: 1, kind: input, shape index: {}]   ;;  %s1262_s2 = inlined_call_operand.vmem [shape: f32[1,96], index: 2, kind: input, shape index: {}]   ;;  %s1263_s3 = inlined_call_operand.hbm [shape: f32[32,32], index: 3, kind: input, shape index: {}]   ;;  %s1264_s4 = inlined_call_operand.vmem [shape: f32[1,32], index: 4, kind: input, shape index: {}]   ;;  %s1265_s5 = inlined_call_operand.hbm [shape: f32[2,8,32], index: 5, kind: output, shape index: {}]  }
   0x1   :  { %12 = vsyncpa [#allocation3 + $0x1], 0 }
   0x2   :  { %13 = vsyncpa [#allocation6], 0 }
   0x3   :  { %14 = vsyncpa [#allocation4], 0 }
   0x4   :  { %16 = vsyncpa [#allocation4 + $0x1], 0  ;;  %s1067_s18 = smov 0   ;;  %s1069_s19 = smov 0  }
   0x5   :  { %s1071_s20 = smov 0   ;;  %s1073_s21 = smov 0  }
   0x6 LB: > { %s174_s24 = sshll.u32 %s1261_s1, 4  ;;  %s1091_s25 = sadd.s32 4294967295, %s1017_s21   ;;  %s1017_s21 = sphi %s1073_s21, %s1276_s21   ;;  %s1013_s20 = sphi %s1071_s20, %s1275_s20   ;;  %s1009_s19 = sphi %s1069_s19, %s1274_s19   ;;  %s1005_s18 = sphi %s1067_s18, %s1273_s18   ;;  %s175_s24 = int_to_ptr.hbm [resolvable:$true] %s174_s24 }
   0x7   : > { %p727_p0 = scmp.ge.s32.totalorder %s1017_s21, 1  ;;  %p43_p1 = scmp.eq.s32.totalorder %s1091_s25, 0 }
   0x8   : > { %p163_p2 = scmp.lt.s32.totalorder %s1017_s21, 3  ;;  %s1019_s27 = smov [#allocation5]  }
   0x9   : > { %s176_s28 = sshll.u32 %s1019_s27, 4  ;;  %s191_s6 = sshll.u32 %s1263_s3, 4  ;;  %s177_s28 = int_to_ptr.vmem [resolvable:$true] %s176_s28  ;;  %s192_s6 = int_to_ptr.hbm [resolvable:$true] %s191_s6 }
   0xa   : > { %p1096_p3 = pnand %p727_p0, %p163_p2  ;;  %s1020_s7 = smov [#allocation7]  }
   0xb   : > { %s193_s8 = sshll.u32 %s1020_s7, 4  ;;  %s1021_s9 = smov 128   ;;  %s194_s8 = int_to_ptr.vmem [resolvable:$true] %s193_s8 }
   0xc   : > { %p768_p4 = pneg %p1096_p3  ;;  %s1022_s10 = smov 8  }
   0xd   : > { %s726_s11 = sadd.s32 4294967294, %s1017_s21   ;;  %s1110_s12 = sadd.s32 1, %s1017_s21  }
   0xe   : > { %p769_p6 = pnand %p768_p4, %p43_p1  ;;  %s26_s13 = ssub.s32 %s1017_s21, %s1110_s12 }
   0xf   : > { %s29_s14 = sadd.s32 1, %s1013_s20  ;;  %p27_p7 = scmp.eq.s32.totalorder %s26_s13, 0 }
  0x10   : > { %771 = dma.hbm_to_vmem [thread:$0]  (!%p769_p6), %s175_s24, 512, %s177_s28, [#allocation6], %s1021_s9, %s1021_s9, %s1022_s10  }
  0x11   : > { %774 = dma.hbm_to_vmem [thread:$0]  (!%p769_p6), %s192_s6, 512, %s194_s8, [#allocation6], %s1021_s9, %s1021_s9, %s1022_s10  }
  0x12   : > { %p36_p8 = scmp.ne.s32.totalorder %s1013_s20, %s1009_s19  ;;  %p37_p9 = scmp.eq.s32.totalorder %s1017_s21, 0 }
  0x13   : > { %p42_p10 = scmp.ne.s32.totalorder %s1009_s19, %s1005_s18  ;;  %p150_p13 = scmp.eq.s32.totalorder %s1091_s25, 1 }
  0x14   : > { %s1121_s15 = scalar_select %p27_p7, %s1013_s20, %s29_s14  }
  0x15   : > { %p1123_p11 = por %p37_p9, %p36_p8  ;;  %p1129_p12 = por %p43_p1, %p42_p10 }
  0x16   : > { %p156_p0 = scmp.eq.s32.totalorder %s726_s11, 1  ;;  %p785_p2 = scmp.lt.s32.totalorder %s1017_s21, 2 }
  0x17   : > { %s210_s22 = sand.u32 1, %s1013_s20   ;;  %p1136_p4 = por %p150_p13, %p36_p8 }
  0x18   : > { %p1140_p6 = por %p156_p0, %p42_p10  ;;  %s731_s27 = sshll.u32 %s210_s22, 3 }
  0x19   : > { %s732_s28 = sshll.u32 %s1017_s21, 3  ;;  %s214_s7 = scalar_lea.vmem [#allocation2], %s731_s27 }
  0x1a   : > { %s218_s6 = scalar_lea.hbm %s1260_s0, %s732_s28  ;;  %s222_s8 = sshll.u32 %s214_s7, 4  ;;  %s223_s8 = int_to_ptr.vmem [resolvable:$true] %s222_s8 }
  0x1b   : > { %s220_s9 = sshll.u32 %s218_s6, 4  ;;  %p1150_p7 = pnand %p785_p2, %p1123_p11  ;;  %s221_s9 = int_to_ptr.hbm [resolvable:$true] %s220_s9 }
  0x1c   : > { %s211_s11 = scalar_lea.sflag [#allocation3], %s210_s22  ;;  %s917_s13 = sshra.s32 %s221_s9, 4  ;;  %s918_s13 = int_to_ptr.hbm [resolvable:$true] %s917_s13 }
  0x1d   : > { %s919_s14 = scalar_lea.hbm %s918_s13, 8  ;;  %p921_p9 = pneg %p1150_p7 }
  0x1e   : > { %p920_p8 = scmp.ne.s32.totalorder %s918_s13, %s919_s14  ;;  %s924_s29 = scalar_lea.hbm %s1260_s0, 16 }
  0x1f   : > { %p925_p11 = scmp.lt.s32.totalorder %s918_s13, %s1260_s0  ;;  %p926_p0 = scmp.lt.s32.totalorder %s924_s29, %s919_s14 }
  0x20   : > { %p922_p10 = pnand %p921_p9, %p920_p8 }
  0x21   : > { %p927_p2 = por %p926_p0, %p925_p11 }
  0x22   : > { %p923_p13 = pneg %p922_p10 }
  0x24   : > { %p928_p5 = pnand %p927_p2, %p923_p13 }
  0x26   : > { %931 = shalt.err (!%p928_p5)
}
  0x27   : > { %778 = dma.hbm_to_vmem [thread:$0]  (!%p1150_p7), %s221_s9, 128, %s223_s8, %s211_s11  }
  0x28   : > { %231 = sbr.rel (%p1096_p3) target bundleno = 1102 (0x44e), region = 40  ;;  %s1167_s22 = sand.u32 (!%p1096_p3), 1, %s1009_s19  }
  0x29   : > { %s734_s6 = sshll.u32 (!%p1096_p3), %s1167_s22, 3  ;;  %s234_s7 = scalar_lea.sflag (!%p1096_p3), [#allocation3], %s1167_s22 }
  0x2a   : > { %s237_s13 = scalar_lea.vmem (!%p1096_p3), [#allocation2], %s734_s6 }
  0x2d   : > { %992 = dma.done.wait (%p1129_p12), %s234_s7, 128  }
  0x2e   : > { %994 = vsyncadd (%p1129_p12), %s234_s7, 4294967168 }
  0x2f   : > { %996 = dma.done.wait (%p43_p1), [#allocation6], 1024  }
  0x30   : > { %998 = vsyncadd (%p43_p1), [#allocation6], 4294966272  ;;  %v279_v0 = vld [vmem:[#allocation5 + $0x18] sm:$0xff]  ;;  %v278_v1 = vld [vmem:[#allocation5 + $0x10] sm:$0xff]  ;;  %vm284_vm0 = vcmask 261120   ;;  %s1023_s8 = smov 72  }
  0x31   : > { %300 = vmatpush.msra.mxu0 %v279_v0  ;;  %v277_v2 = vld [vmem:[#allocation5 + $0x8] sm:$0xff]  ;;  %v276_v3 = vld [vmem:[#allocation5] sm:$0xff]  ;;  %v275_v4 = vld [vmem:[%s237_s13] sm:$0xff]  ;;  %s1024_s9 = smov 120   ;;  %s1025_s10 = smov 96   ;;  %vm311_vm1 = vcmask 64512  }
  0x32   : > { %v839_v5 = vld [vmem:[%s1262_s2] ss:$0 sm:$0xff]  ;;  %s1026_s11 = smov 112   ;;  %s1027_s14 = smov 80   ;;  %vm585_vm2 = vcmask 130048   ;;  %vm587_vm3 = vcmask 195584  }
  0x33   : > { %301 = vmatpush.msra.mxu0 %v278_v1  ;;  %s1028_s27 = smov 88   ;;  %s1029_s28 = smov 104  }
  0x34   : > { %s1030_s29 = smov 64   ;;  %s1031_s30 = smov 40  }
  0x35   : > { %302 = vmatpush.msra.mxu0 %v277_v2  ;;  %s1032_s16 = smov 56   ;;  %s1033_s7 = smov 48  }
  0x36   : > { %s1034_s13 = smov 16   ;;  %s1035_s26 = smov 8  }
  0x37   : > { %303 = vmatpush.msra.mxu0 %v276_v3  ;;  %s1036_s17 = smov 24   ;;  %v592_v3 = vld [vmem:[#allocation7 + $0x18] sm:$0xff] }
  0x38   : > { %738 = vmatmul.msk.f32.vlgmr.msra.gmra.mxu0 %vm284_vm0, %v275_v4  ;;  %v591_v4 = vld [vmem:[#allocation7 + $0x10] sm:$0xff] }
  0xb5   : > { %v305_v6 = vpop.f32.mrf.mxu0 }
  0xb6   : > { %v1185_v7 = vadd.f32 %v839_v5, %v305_v6  ;;  %v590_v5 = vld [vmem:[#allocation7 + $0x8] sm:$0xff]  ;;  %v589_v6 = vld [vmem:[#allocation7] sm:$0xff] }
  0xb8   : > { %508 = vrot.lane.b32.xlu2 %v1185_v7, %s1023_s8  ;;  %374 = vrot.lane.b32.xlu1 %v1185_v7, %s1024_s9  ;;  %s753_s8 = sshll.u32 %s1091_s25, 3  ;;  %s622_s25 = scalar_lea.sflag [#allocation4], %s1167_s22 }
  0xb9   : > { %309 = vrot.lane.b32.xlu0 %v1185_v7, %s1025_s10 }
  0xc0   : > { %440 = vrot.lane.b32.xlu2 %v1185_v7, %s1026_s11  ;;  %442 = vrot.lane.b32.xlu1 %v1185_v7, %s1027_s14  ;;  %s632_s11 = scalar_lea.hbm %s1265_s5, %s753_s8 }
  0xc1   : > { %376 = vrot.lane.b32.xlu0 %v1185_v7, %s1028_s27 }
  0xc9   : > { %506 = vrot.lane.b32.xlu0 %v1185_v7, %s1029_s28  ;;  %s274_s28 = scalar_lea.vmem [#allocation8], %s734_s6  ;;  %s967_s6 = scalar_lea.hbm %s1265_s5, 16 }
 0x112   : > { %v509_v8 = vpop.permute.xlu2 %508 }
 0x113   : > { %748 = vmatpush.xpose.msk.msrb.mxu0 %vm311_vm1, %v509_v8 }
 0x11a   : > { %v441_v13 = vpop.permute.xlu2 %440 }
 0x12a   : > { %v375_v9 = vpop.permute.xlu1 %374 }
 0x12b   : > { %v310_v10 = vpop.permute.xlu0 %309 }
 0x12c   : > { %739 = vmatpush.xpose.msk.msra.mxu1 %vm311_vm1, %v310_v10 }
 0x12f   : > { %740 = vmatmul.msk.f32.vlgmr.msra.gmra.mxu1 %vm311_vm1, %v1185_v7 }
 0x132   : > { %v443_v11 = vpop.permute.xlu1 %442 }
 0x133   : > { %v377_v12 = vpop.permute.xlu0 %376  ;;  %745 = vmatpush.xpose.msk.msrb.mxu1 %vm311_vm1, %v443_v11 }
 0x134   : > { %742 = vmatpush.xpose.msk.msra.mxu3 %vm311_vm1, %v377_v12 }
 0x137   : > { %743 = vmatmul.msk.f32.vlgmr.msra.gmra.mxu3 %vm311_vm1, %v375_v9  ;;  %746 = vmatmul.msk.f32.vlgmr.msrb.gmra.mxu1 %vm311_vm1, %v441_v13  ;;  %v840_v13 = vld [vmem:[%s1264_s4] ss:$0 sm:$0xff] }
 0x138   : > { %612 = vmatpush.msra.mxu1 %v592_v3 }
 0x13a   : > { %613 = vmatpush.msra.mxu1 %v591_v4 }
 0x13b   : > { %v507_v14 = vpop.permute.xlu0 %506 }
 0x13c   : > { %749 = vmatmul.msk.f32.vlgmr.msrb.gmra.mxu0 %vm311_vm1, %v507_v14  ;;  %614 = vmatpush.msra.mxu1 %v590_v5 }
 0x13e   : > { %615 = vmatpush.msra.mxu1 %v589_v6 }
 0x1ac   : > { %v333_v15 = vpop.f32.mrf.mxu1 }
 0x1ad   : > { %v336_v16 = vmul.f32 0.35355338, %v333_v15 }
 0x1af   : > { %v337_v17 = vsel %vm311_vm1, %v336_v16, -inf }
 0x1b0   : > { %338 = vmax.xlane.f32.xlu1 %v337_v17 }
 0x1b4   : > { %v465_v18 = vpop.f32.mrf.mxu1 }
 0x1b5   : > { %v468_v19 = vmul.f32 0.35355338, %v465_v18 }
 0x1b7   : > { %v469_v20 = vsel %vm311_vm1, %v468_v19, -inf }
 0x1b8   : > { %470 = vmax.xlane.f32.xlu0 %v469_v20 }
 0x1b9   : > { %v531_v24 = vpop.f32.mrf.mxu0 }
 0x1ba   : > { %v399_v21 = vpop.f32.mrf.mxu3  ;;  %v534_v25 = vmul.f32 0.35355338, %v531_v24 }
 0x1bb   : > { %v402_v22 = vmul.f32 0.35355338, %v399_v21 }
 0x1bc   : > { %v535_v26 = vsel %vm311_vm1, %v534_v25, -inf }
 0x1bd   : > { %v403_v23 = vsel %vm311_vm1, %v402_v22, -inf }
 0x1be   : > { %404 = vmax.xlane.f32.xlu2 %v403_v23 }
 0x1c6   : > { %536 = vmax.xlane.f32.xlu2 %v535_v26 }
 0x1cc   : > { %348 = vrot.lane.b32.xlu0 %v1185_v7, %s1030_s29  ;;  %s634_s29 = sshll.u32 %s274_s28, 4  ;;  %s635_s29 = int_to_ptr.vmem [resolvable:$true] %s634_s29 }
 0x1d4   : > { %546 = vrot.lane.b32.xlu0 %v1185_v7, %s1031_s30  ;;  %s636_s30 = sshll.u32 %s632_s11, 4  ;;  %s637_s30 = int_to_ptr.hbm [resolvable:$true] %s636_s30 }
 0x223   : > { %v339_v27 = vpop.xlane.xlu1 %338 }
 0x224   : > { %v340_v28 = vsub.f32 %v336_v16, %v339_v27 }
 0x226   : > { %v341_v29 = vmul.f32 1.442695, %v340_v28 }
 0x228   : > { %841 = vpow2.f32 %v341_v29 }
 0x22b   : > { %v471_v30 = vpop.xlane.xlu0 %470 }
 0x22c   : > { %v472_v31 = vsub.f32 %v468_v19, %v471_v30 }
 0x22e   : > { %v842_v32 = vpop.eup %841  ;;  %v473_v33 = vmul.f32 1.442695, %v472_v31 }
 0x22f   : > { %v343_v34 = vsel %vm311_vm1, %v842_v32, 0.0 }
 0x230   : > { %843 = vpow2.f32 %v473_v33  ;;  %344 = vadd.xlane.f32.xlu1 %v343_v34 }
 0x231   : > { %v405_v35 = vpop.xlane.xlu2 %404 }
 0x232   : > { %v406_v40 = vsub.f32 %v402_v22, %v405_v35 }
 0x234   : > { %v407_v43 = vmul.f32 1.442695, %v406_v40 }
 0x236   : > { %v844_v36 = vpop.eup %843 }
 0x237   : > { %v475_v37 = vsel %vm311_vm1, %v844_v36, 0.0 }
 0x238   : > { %476 = vadd.xlane.f32.xlu1 %v475_v37 }
 0x239   : > { %v537_v38 = vpop.xlane.xlu2 %536 }
 0x23a   : > { %v538_v39 = vsub.f32 %v534_v25, %v537_v38 }
 0x23c   : > { %v539_v41 = vmul.f32 1.442695, %v538_v39 }
 0x23e   : > { %845 = vpow2.f32 %v539_v41  ;;  %v349_v42 = vpop.permute.xlu0 %348 }
 0x23f   : > { %369 = vmatpush.msra.mxu2 %v349_v42  ;;  %847 = vpow2.f32 %v407_v43 }
 0x244   : > { %v846_v44 = vpop.eup %845 }
 0x245   : > { %v541_v45 = vsel %vm311_vm1, %v846_v44, 0.0  ;;  %v848_v46 = vpop.eup %847 }
 0x246   : > { %542 = vadd.xlane.f32.xlu2 %v541_v45  ;;  %v409_v47 = vsel %vm311_vm1, %v848_v46, 0.0  ;;  %v547_v55 = vpop.permute.xlu0 %546 }
 0x24e   : > { %410 = vadd.xlane.f32.xlu2 %v409_v47 }
 0x251   : > { %414 = vrot.lane.b32.xlu1 %v1185_v7, %s1032_s16  ;;  %s961_s16 = sshra.s32 %s637_s30, 4  ;;  %s962_s16 = int_to_ptr.hbm [resolvable:$true] %s961_s16 }
 0x252   : > { %p968_p12 = scmp.lt.s32.totalorder %s962_s16, %s1265_s5 }
 0x266   : > { %480 = vrot.lane.b32.xlu2 %v1185_v7, %s1033_s7  ;;  %s963_s7 = scalar_lea.hbm %s962_s16, 8 }
 0x267   : > { %p964_p1 = scmp.ne.s32.totalorder %s962_s16, %s963_s7  ;;  %p969_p7 = scmp.lt.s32.totalorder %s967_s6, %s963_s7 }
 0x269   : > { %p965_p3 = pnand %p964_p1, %p1136_p4  ;;  %p970_p8 = por %p969_p7, %p968_p12 }
 0x26b   : > { %p966_p5 = pneg %p965_p3 }
 0x26d   : > { %p971_p9 = pnand %p970_p8, %p966_p5 }
 0x2a3   : > { %v345_v48 = vpop.xlane.xlu1 %344 }
 0x2a4   : > { %849 = vrcp.f32 %v345_v48 }
 0x2aa   : > { %v850_v49 = vpop.eup %849 }
 0x2ab   : > { %v347_v50 = vmul.f32 %v850_v49, %v842_v32  ;;  %v477_v52 = vpop.xlane.xlu1 %476 }
 0x2ac   : > { %851 = vrcp.f32 %v477_v52 }
 0x2ad   : > { %741 = vmatmul.msk.f32.vlgmr.msra.gmra.mxu2 %vm311_vm1, %v347_v50 }
 0x2b2   : > { %v852_v56 = vpop.eup %851 }
 0x2b3   : > { %v479_v60 = vmul.f32 %v852_v56, %v844_v36 }
 0x2b9   : > { %v543_v51 = vpop.xlane.xlu2 %542 }
 0x2c1   : > { %v411_v53 = vpop.xlane.xlu2 %410 }
 0x2c2   : > { %853 = vrcp.f32 %v411_v53 }
 0x2c3   : > { %v415_v54 = vpop.permute.xlu1 %414  ;;  %855 = vrcp.f32 %v543_v51 }
 0x2c4   : > { %435 = vmatpush.msrb.mxu2 %v415_v54 }
 0x2c6   : > { %567 = vmatpush.msra.mxu2 %v547_v55 }
 0x2c8   : > { %v854_v57 = vpop.eup %853 }
 0x2c9   : > { %v481_v58 = vpop.permute.xlu2 %480  ;;  %v413_v59 = vmul.f32 %v854_v57, %v848_v46  ;;  %v856_v61 = vpop.eup %855 }
 0x2ca   : > { %501 = vmatpush.msrb.mxu3 %v481_v58  ;;  %v545_v62 = vmul.f32 %v856_v61, %v846_v44 }
 0x2cb   : > { %744 = vmatmul.msk.f32.vlgmr.msrb.gmra.mxu2 %vm311_vm1, %v413_v59  ;;  %747 = vmatmul.msk.f32.vlgmr.msrb.gmra.mxu3 %vm311_vm1, %v479_v60 }
 0x2d3   : > { %750 = vmatmul.msk.f32.vlgmr.msra.gmra.mxu2 %vm311_vm1, %v545_v62 }
 0x330   : > { %v371_v63 = vpop.f32.mrf.mxu2 }
 0x34e   : > { %v437_v0 = vpop.f32.mrf.mxu2  ;;  %v503_v1 = vpop.f32.mrf.mxu3 }
 0x34f   : > { %577 = vrot.lane.b32.xlu1 %v503_v1, %s1034_s13  ;;  %573 = vrot.lane.b32.xlu0 %v437_v0, %s1035_s26 }
 0x356   : > { %v569_v2 = vpop.f32.mrf.mxu2 }
 0x357   : > { %581 = vrot.lane.b32.xlu0 %v569_v2, %s1036_s17 }
 0x3c1   : > { %v574_v7 = vpop.permute.xlu0 %573  ;;  %v578_v8 = vpop.permute.xlu1 %577 }
 0x3c2   : > { %v584_v9 = vsel %vm311_vm1, %v371_v63, %v574_v7 }
 0x3c3   : > { %v586_v10 = vsel %vm585_vm2, %v584_v9, %v578_v8 }
 0x3c9   : > { %v582_v11 = vpop.permute.xlu0 %581 }
 0x3ca   : > { %v588_v12 = vsel %vm587_vm3, %v586_v10, %v582_v11 }
 0x3cb   : > { %751 = vmatmul.msk.f32.vlgmr.msra.gmra.mxu1 %vm284_vm0, %v588_v12 }
 0x448   : > { %v617_v14 = vpop.f32.mrf.mxu1 }
 0x449   : > { %v618_v15 = vadd.f32 %v840_v13, %v617_v14 }
 0x44b   : > { %620 = vst.msk [vmem:[%s274_s28] sm:$0xff] %vm284_vm0, %v618_v15 }
 0x44c   : > { %974 = shalt.err (!%p971_p9)
}
 0x44d   : > { %766 = dma.vmem_to_hbm [thread:$0]  (%p1136_p4), %s635_s29, 128, %s637_s30, %s622_s25  }
 0x44e PF: > { %s648_s22 = sand.u32 1, %s1005_s18   ;;  %p1272_p10 = scmp.ge.s32.totalorder %s1017_s21, 2 }
 0x44f   : > { %s649_s9 = scalar_lea.sflag [#allocation4], %s648_s22 }
 0x450   : > { %p780_p13 = pnand %p1272_p10, %p1140_p6 }
 0x452   : > { %p781_p11 = pneg %p780_p13 }
 0x454   : > { %1000 = dma.done.wait (%p781_p11), %s649_s9, 128  }
 0x455   : > { %1002 = vsyncadd (%p781_p11), %s649_s9, 4294967168  ;;  %p19_p0 = scmp.ge.s32.totalorder %s1110_s12, 4   ;;  %s1273_s18 = smov %s1009_s19 }
 0x456   : > { %s1274_s19 = smov %s1013_s20  ;;  %s1275_s20 = smov %s1121_s15 }
 0x457   : > { %s1276_s21 = smov %s1110_s12  ;;  %21 = sbr.rel (!%p19_p0) target bundleno = 6 (0x6), region = 93 }
 0x45c   :  { %655 = vsyncpa [#allocation3], 1 }
 0x45d   :  { %657 = vsyncpa [#allocation3 + $0x1], 1 }
 0x45e   :  { %658 = vsyncpa [#allocation6], 1 }
 0x45f   :  { %659 = vsyncpa [#allocation4], 1 }
 0x460   :  { %661 = vsyncpa [#allocation4 + $0x1], 1 }

</bundles_post_ra>
